<compile_context>
chip_gen: v6e
topology: v6e:2x2x1
jax: 0.10.0
libtpu: 0.0.40
codegen_flags: <defaults>
</compile_context>

<pallas_src>
import jax
import jax.numpy as jnp
from jax.experimental import pallas as pl
from jax.experimental.pallas import tpu as pltpu


def _linear_vpu_kernel(x_ref, wt_ref, b_ref, o_ref):
    # x_ref: (Bblk, IN), wt_ref: (IN, OUT), b_ref: (1, OUT), o_ref: (Bblk, OUT)
    x = x_ref[...].astype(jnp.float32)
    wt = wt_ref[...].astype(jnp.float32)
    y = b_ref[...].astype(jnp.float32)          # (1, OUT) -> broadcasts to (Bblk, OUT)
    in_features = wt_ref.shape[0]                # static (== 4)
    # Statically unrolled VPU contraction over the tiny IN dim:
    # y += x[:, k:k+1] * wT[k, :]  for k in 0..IN-1
    for k in range(in_features):
        y = y + x[:, k:k + 1] * wt[k:k + 1, :]
    o_ref[...] = y.astype(o_ref.dtype)


def linear_forward(x, weight, bias, *, block_b=1024):
    """Equivalent of torch.nn.Linear(in_features, out_features).forward(x).

    x:      (..., in_features)
    weight: (out_features, in_features)   (torch layout)
    bias:   (out_features,)
    """
    out_features, in_features = weight.shape
    orig_shape = x.shape
    x2d = x.reshape(-1, in_features)
    B = x2d.shape[0]

    # One-time, free-in-XLA prep: transpose weight, make bias 2D.
    wT = weight.T                                # (IN, OUT)
    bias2d = bias.reshape(1, out_features)       # (1, OUT)

    out_shape = jax.ShapeDtypeStruct((B, out_features), x.dtype)

    if B <= block_b:
        # Small batch: gridless call, whole (tiny) operands resident in VMEM.
        y2d = pl.pallas_call(
            _linear_vpu_kernel,
            out_shape=out_shape,
            in_specs=[
                pl.BlockSpec(memory_space=pltpu.MemorySpace.VMEM),
                pl.BlockSpec(memory_space=pltpu.MemorySpace.VMEM),
                pl.BlockSpec(memory_space=pltpu.MemorySpace.VMEM),
            ],
            out_specs=pl.BlockSpec(memory_space=pltpu.MemorySpace.VMEM),
        )(x2d, wT, bias2d)
    else:
        # Large batch: tile B with big row blocks (multiple of 8 for f32
        # sublanes), weight/bias stay full-extent; batch axis is parallel so
        # v7x's two TensorCores can share it.
        grid = (pl.cdiv(B, block_b),)
        y2d = pl.pallas_call(
            _linear_vpu_kernel,
            out_shape=out_shape,
            grid=grid,
            in_specs=[
                pl.BlockSpec((block_b, in_features), lambda i: (i, 0)),
                pl.BlockSpec((in_features, out_features), lambda i: (0, 0)),
                pl.BlockSpec((1, out_features), lambda i: (0, 0)),
            ],
            out_specs=pl.BlockSpec((block_b, out_features), lambda i: (i, 0)),
            compiler_params=pltpu.CompilerParams(
                dimension_semantics=("parallel",)
            ),
        )(x2d, wT, bias2d)

    return y2d.reshape(*orig_shape[:-1], out_features)


if __name__ == "__main__":
    key = jax.random.PRNGKey(0)
    kx, kw, kb = jax.random.split(key, 3)

    B, IN, OUT = 8, 4, 4
    x = jax.random.normal(kx, (B, IN), dtype=jnp.float32)
    # Deterministic "nn.Linear" params (uniform in +/- 1/sqrt(in_features),
    # matching torch's default init range).
    bound = 1.0 / jnp.sqrt(jnp.float32(IN))
    weight = jax.random.uniform(kw, (OUT, IN), dtype=jnp.float32,
                                minval=-bound, maxval=bound)
    bias = jax.random.uniform(kb, (OUT,), dtype=jnp.float32,
                              minval=-bound, maxval=bound)

    y = linear_forward(x, weight, bias)
    jax.block_until_ready(y)

    # Sanity-check against pure-JAX reference (exact nn.Linear semantics).
    y_ref = x @ weight.T + bias
    assert y.shape == y_ref.shape, "shape mismatch vs reference"
    assert jnp.allclose(y, y_ref, atol=1e-5, rtol=1e-5), "mismatch vs reference"

    # Also exercise the tiled (large-B, parallel-axis) path once for coverage.
    B_big = 4096
    x_big = jax.random.normal(kx, (B_big, IN), dtype=jnp.float32)
    y_big = linear_forward(x_big, weight, bias)
    jax.block_until_ready(y_big)
    y_big_ref = x_big @ weight.T + bias
    assert jnp.allclose(y_big, y_big_ref, atol=1e-5, rtol=1e-5), \
        "mismatch vs reference (tiled path)"

    print("KERNEL_OK")
</pallas_src>

<mosaic_0001>
module attributes {stable_mosaic.version = 11 : i64} {
  func.func @_linear_vpu_kernel(%arg0: memref<8x4xf32, #tpu.memory_space<vmem>>, %arg1: memref<4x4xf32, #tpu.memory_space<vmem>>, %arg2: memref<1x4xf32, #tpu.memory_space<vmem>>, %arg3: memref<8x4xf32, #tpu.memory_space<vmem>>) attributes {dimension_semantics = [], scalar_prefetch = 0 : i64, scratch_operands = 0 : i64, tpu.core_type = #tpu.core_type<tc>} {
    %c0 = arith.constant 0 : index
    %c0_0 = arith.constant 0 : index
    %0 = vector.load %arg0[%c0, %c0_0] : memref<8x4xf32, #tpu.memory_space<vmem>>, vector<8x4xf32>
    %c0_1 = arith.constant 0 : index
    %c0_2 = arith.constant 0 : index
    %1 = vector.load %arg1[%c0_1, %c0_2] : memref<4x4xf32, #tpu.memory_space<vmem>>, vector<4x4xf32>
    %c0_3 = arith.constant 0 : index
    %c0_4 = arith.constant 0 : index
    %2 = vector.load %arg2[%c0_3, %c0_4] : memref<1x4xf32, #tpu.memory_space<vmem>>, vector<1x4xf32>
    %3 = vector.extract_strided_slice %0 {offsets = [0, 0], sizes = [8, 1], strides = [1, 1]} : vector<8x4xf32> to vector<8x1xf32>
    %4 = vector.extract_strided_slice %1 {offsets = [0, 0], sizes = [1, 4], strides = [1, 1]} : vector<4x4xf32> to vector<1x4xf32>
    %5 = vector.broadcast %3 : vector<8x1xf32> to vector<8x4xf32>
    %6 = vector.broadcast %4 : vector<1x4xf32> to vector<8x4xf32>
    %7 = arith.mulf %5, %6 : vector<8x4xf32>
    %8 = vector.broadcast %2 : vector<1x4xf32> to vector<8x4xf32>
    %9 = arith.addf %8, %7 : vector<8x4xf32>
    %10 = vector.extract_strided_slice %0 {offsets = [0, 1], sizes = [8, 1], strides = [1, 1]} : vector<8x4xf32> to vector<8x1xf32>
    %11 = vector.extract_strided_slice %1 {offsets = [1, 0], sizes = [1, 4], strides = [1, 1]} : vector<4x4xf32> to vector<1x4xf32>
    %12 = vector.broadcast %10 : vector<8x1xf32> to vector<8x4xf32>
    %13 = vector.broadcast %11 : vector<1x4xf32> to vector<8x4xf32>
    %14 = arith.mulf %12, %13 : vector<8x4xf32>
    %15 = arith.addf %9, %14 : vector<8x4xf32>
    %16 = vector.extract_strided_slice %0 {offsets = [0, 2], sizes = [8, 1], strides = [1, 1]} : vector<8x4xf32> to vector<8x1xf32>
    %17 = vector.extract_strided_slice %1 {offsets = [2, 0], sizes = [1, 4], strides = [1, 1]} : vector<4x4xf32> to vector<1x4xf32>
    %18 = vector.broadcast %16 : vector<8x1xf32> to vector<8x4xf32>
    %19 = vector.broadcast %17 : vector<1x4xf32> to vector<8x4xf32>
    %20 = arith.mulf %18, %19 : vector<8x4xf32>
    %21 = arith.addf %15, %20 : vector<8x4xf32>
    %22 = vector.extract_strided_slice %0 {offsets = [0, 3], sizes = [8, 1], strides = [1, 1]} : vector<8x4xf32> to vector<8x1xf32>
    %23 = vector.extract_strided_slice %1 {offsets = [3, 0], sizes = [1, 4], strides = [1, 1]} : vector<4x4xf32> to vector<1x4xf32>
    %24 = vector.broadcast %22 : vector<8x1xf32> to vector<8x4xf32>
    %25 = vector.broadcast %23 : vector<1x4xf32> to vector<8x4xf32>
    %26 = arith.mulf %24, %25 : vector<8x4xf32>
    %27 = arith.addf %21, %26 : vector<8x4xf32>
    %c0_5 = arith.constant 0 : index
    %c0_6 = arith.constant 0 : index
    %28 = vector.load %arg3[%c0_5, %c0_6] : memref<8x4xf32, #tpu.memory_space<vmem>>, vector<8x4xf32>
    tpu.vector_store %arg3[%c0_5, %c0_6], %27 {strides = array<i32>} : memref<8x4xf32, #tpu.memory_space<vmem>>, vector<8x4xf32>,
    return
  }
}

</mosaic_0001>

<bundles_post_ra>
// kernel: tpu_custom_call.1
= control target key start
LH: loop header
LB: loop body
LE: loop exit
PB: predicated region body
PF: predicated region fallthrough
CT: control target
= control target key end

     0   :  { %v80_v0 = vmov 0   ;;  %v81_v2 = vmov 2   ;;  %v82_v3 = vmov 1   ;;  %v83_v4 = vmov 3   ;;  %s116_s0 = inlined_call_operand.vmem [shape: f32[8,4], index: 0, kind: input, shape index: {}]   ;;  %s117_s1 = inlined_call_operand.vmem [shape: f32[4,4], index: 1, kind: input, shape index: {}]   ;;  %s118_s2 = inlined_call_operand.vmem [shape: f32[1,4], index: 2, kind: input, shape index: {}]   ;;  %s119_s3 = inlined_call_operand.vmem [shape: f32[8,4], index: 3, kind: output, shape index: {}]  }
   0x1   :  { %75 = vset.pattern.permute.xlu0 %v80_v0  ;;  %v14_v1 = vld [vmem:[%s116_s0] sm:$0xff]  ;;  %77 = vset.pattern.permute.xlu1 %v81_v2  ;;  %v22_v5 = vlaneseq  ;;  %vm64_vm0 = vcmask 31744  }
   0x2   :  { %19 = vperm.xlu0 %75, %v14_v1   ;;  %45 = vperm.xlu1 %77, %v14_v1   ;;  %v15_v8 = vld [vmem:[%s117_s1] sm:$0xf] }
   0x3   :  { %v23_v6 = vshrl.u32 %v22_v5, 7  ;;  %v70_v17 = vld [vmem:[%s118_s2] ss:$0 sm:$0xff] }
   0x5   :  { %v24_v7 = vsub.s32 0, %v23_v6  ;;  %v40_v10 = vsub.s32 1, %v23_v6  ;;  %v50_v12 = vsub.s32 2, %v23_v6  ;;  %v60_v14 = vsub.s32 3, %v23_v6 }
   0x6   :  { %76 = vset.pattern.permute.xlu0 %v82_v3  ;;  %78 = vset.pattern.permute.xlu1 %v83_v4 }
   0x7   :  { %35 = vperm.xlu0 %76, %v14_v1   ;;  %55 = vperm.xlu1 %78, %v14_v1   ;;  %v25_v9 = vrot.slane %v15_v8, %v24_v7  ;;  %v41_v16 = vrot.slane %v15_v8, %v40_v10  ;;  %v51_v18 = vrot.slane %v15_v8, %v50_v12 }
   0x8   :  { %v61_v19 = vrot.slane %v15_v8, %v60_v14 }
   0xb   :  { %79 = vset.pattern.permute.xlu0 %v83_v4 }
  0x7d   :  { %v20_v11 = vpop.permute.xlu0 %19  ;;  %v46_v13 = vpop.permute.xlu1 %45 }
  0x7e   :  { %v26_v15 = vmul.f32 %v25_v9, %v20_v11  ;;  %v52_v24 = vmul.f32 %v51_v18, %v46_v13 }
  0x80   :  { %v33_v22 = vadd.f32 %v70_v17, %v26_v15 }
  0x82   :  { %v36_v20 = vpop.permute.xlu0 %35  ;;  %v56_v21 = vpop.permute.xlu1 %55 }
  0x83   :  { %v42_v23 = vmul.f32 %v41_v16, %v36_v20  ;;  %v62_v26 = vmul.f32 %v61_v19, %v56_v21 }
  0x85   :  { %v43_v25 = vadd.f32 %v42_v23, %v33_v22 }
  0x87   :  { %v53_v27 = vadd.f32 %v52_v24, %v43_v25 }
  0x89   :  { %v63_v28 = vadd.f32 %v62_v26, %v53_v27 }
  0x8b   :  { %65 = vst.msk [vmem:[%s119_s3] sm:$0xff] %vm64_vm0, %v63_v28 }

</bundles_post_ra>
